<compile_context>
chip_gen: v6e
topology: v6e:2x2x1
jax: 0.10.0
libtpu: 0.0.40
codegen_flags: <defaults>
</compile_context>

<pallas_src>
import jax
import jax.numpy as jnp
from jax.experimental import pallas as pl
from jax.experimental.pallas import tpu as pltpu


PAD = 128  # vreg lane width; every feature/hidden/class dim is padded to this


def _round_up(n, m):
    return ((n + m - 1) // m) * m


def _mlp_kernel(x_ref, w_ref, b_ref, out_ref):
    """Fused (Linear->BN->ReLU)*H -> Linear -> Softmax on one batch tile.

    x_ref:   (TB, P)   bf16  lane-dense, feature-padded input tile
    w_ref:   (L, P, P) bf16  weight pack (BN + bias folded, zero-padded)
    b_ref:   (L, P)    f32   shift pack (final row: -inf in fake class lanes)
    out_ref: (TB, P)   f32   lane-dense softmax tile (real classes in [:, :C])
    """
    n_layers = w_ref.shape[0]
    h = x_ref[...]                                        # bf16 (TB, P)
    logits = None
    for li in range(n_layers):                            # static, fully unrolled
        acc = jnp.dot(h, w_ref[li], preferred_element_type=jnp.float32)
        acc = acc + b_ref[li:li + 1, :]                   # full-vreg row add
        if li < n_layers - 1:
            # ReLU (BatchNorm already folded into weight/shift on the host);
            # padded lanes are 0*W + 0 -> ReLU(0) = 0, so they stay inert.
            h = jnp.maximum(acc, 0.0).astype(jnp.bfloat16)
        else:
            logits = acc

    # Softmax over the padded (lane-dense) class dim; padded lanes carry a -inf
    # bias (with zero weight columns) so they contribute exp(-inf) = 0.
    m = jnp.max(logits, axis=-1, keepdims=True)
    e = jnp.exp(logits - m)
    denom = jnp.sum(e, axis=-1, keepdims=True)
    inv = pl.reciprocal(denom, approx=True)               # EUP slot (nearly free)
    inv = inv * (2.0 - denom * inv)                       # one Newton step -> ~f32 accuracy
    out_ref[...] = (e * inv).astype(out_ref.dtype)


def make_raw_params(key, fcs, input_nodes, num_classes, dtype=jnp.float32):
    """Deterministic synthetic parameters matching the PyTorch module's shapes."""
    raw_hidden = []
    last = input_nodes
    for n in fcs:
        key, kw, kb, kg, kbe, km, kv = jax.random.split(key, 7)
        bound = 1.0 / float(last) ** 0.5
        w = jax.random.uniform(kw, (last, n), dtype, -bound, bound)      # Linear weight (in,out)
        b = jax.random.uniform(kb, (1, n), dtype, -bound, bound)         # Linear bias
        gamma = 1.0 + 0.1 * jax.random.normal(kg, (1, n), dtype)         # BN weight
        beta = 0.1 * jax.random.normal(kbe, (1, n), dtype)               # BN bias
        mean = 0.1 * jax.random.normal(km, (1, n), dtype)                # BN running_mean
        var = jnp.abs(1.0 + 0.1 * jax.random.normal(kv, (1, n), dtype))  # BN running_var
        raw_hidden.append((w, b, gamma, beta, mean, var))
        last = n
    key, kw, kb = jax.random.split(key, 3)
    bound = 1.0 / float(last) ** 0.5
    wf = jax.random.uniform(kw, (last, num_classes), dtype, -bound, bound)
    bf = jax.random.uniform(kb, (1, num_classes), dtype, -bound, bound)
    return raw_hidden, (wf, bf)


def fold_params(raw_hidden, raw_final, input_nodes, num_classes, eps=1e-5):
    """Fold BN + biases into one lane-dense bf16 weight pack + one f32 shift pack."""
    widths = [input_nodes] + [hw[0].shape[1] for hw in raw_hidden] + [raw_final[0].shape[1]]
    P = _round_up(max(widths), PAD)
    n_layers = len(raw_hidden) + 1

    w_pack = jnp.zeros((n_layers, P, P), jnp.float32)
    b_pack = jnp.zeros((n_layers, P), jnp.float32)

    for li, (w, b, gamma, beta, mean, var) in enumerate(raw_hidden):
        scale = gamma / jnp.sqrt(var + eps)                         # (1, n)
        k, n = w.shape
        w_pack = w_pack.at[li, :k, :n].set(w * scale)               # W' = W * scale
        b_pack = b_pack.at[li, :n].set((b * scale + beta - mean * scale)[0])

    wf, bf = raw_final
    k, c = wf.shape
    w_pack = w_pack.at[n_layers - 1, :k, :c].set(wf)
    b_last = jnp.full((P,), -jnp.inf, jnp.float32).at[:c].set(bf[0])
    b_pack = b_pack.at[n_layers - 1].set(b_last)

    # Correctness guard: fake-class weight columns must be exactly zero so the
    # -inf bias fully suppresses them in softmax (no probability leak).
    assert bool(jnp.all(w_pack[n_layers - 1, :, c:] == 0.0))

    return w_pack.astype(jnp.bfloat16), b_pack, P


def network_forward(x, w_pack, b_pack, num_classes, batch_tile=None):
    """Fused Pallas MLP. x: (B, input_nodes) f32 -> (B, num_classes) f32 probs."""
    B, d_in = x.shape
    P = w_pack.shape[-1]

    # Few, large grid steps: take the whole batch in one tile when it fits
    # (even TB=1024 is <1 MiB per double-buffered tile — trivial on any chip's VMEM).
    tb = batch_tile if batch_tile is not None else min(B, 1024)
    tb = max(16, _round_up(tb, 16))               # 16-row alignment for bf16 sublanes
    num_tiles = pl.cdiv(B, tb)
    b_pad = num_tiles * tb

    # Host-side: cast input to bf16 (MXU-native, halves input DMA) and zero-pad
    # features to the lane-dense width P and batch rows to the tile boundary.
    xp = jnp.zeros((b_pad, P), jnp.bfloat16).at[:B, :d_in].set(x.astype(jnp.bfloat16))

    out = pl.pallas_call(
        _mlp_kernel,
        out_shape=jax.ShapeDtypeStruct((b_pad, P), jnp.float32),
        grid=(num_tiles,),
        in_specs=[
            pl.BlockSpec((tb, P), lambda i: (i, 0)),             # batch-tiled input
            pl.BlockSpec(w_pack.shape, lambda i: (0, 0, 0)),     # resident weight pack
            pl.BlockSpec(b_pack.shape, lambda i: (0, 0)),        # resident shift pack
        ],
        out_specs=pl.BlockSpec((tb, P), lambda i: (i, 0)),       # lane-dense store
        compiler_params=pltpu.CompilerParams(
            dimension_semantics=("parallel",)),                  # 2 TCs on v7x when grid > 1
    )(xp, w_pack, b_pack)

    return out[:B, :num_classes]


def network_reference_folded(x, w_pack, b_pack, num_classes):
    """Pure-JAX reference on the identical folded/padded bf16 params (tight tol)."""
    P = w_pack.shape[-1]
    n_layers = w_pack.shape[0]
    h = jnp.zeros((x.shape[0], P), jnp.bfloat16).at[:, :x.shape[1]].set(
        x.astype(jnp.bfloat16))
    logits = None
    for li in range(n_layers):
        acc = jnp.dot(h, w_pack[li], preferred_element_type=jnp.float32) + b_pack[li:li + 1]
        if li < n_layers - 1:
            h = jnp.maximum(acc, 0.0).astype(jnp.bfloat16)
        else:
            logits = acc
    return jax.nn.softmax(logits[:, :num_classes], axis=-1)


def network_reference_f32(x, raw_hidden, raw_final, eps=1e-5):
    """Pure-JAX f32 reference of the original (un-folded) PyTorch module."""
    h = x.astype(jnp.float32)
    for (w, b, gamma, beta, mean, var) in raw_hidden:
        h = h @ w + b
        h = (h - mean) / jnp.sqrt(var + eps) * gamma + beta
        h = jnp.maximum(h, 0.0)
    wf, bf = raw_final
    return jax.nn.softmax(h @ wf + bf, axis=-1)


if __name__ == "__main__":
    key = jax.random.PRNGKey(0)

    # Network(fcs=[64, 32], input_nodes=32, num_classes=10, drop_rate=None)
    fcs = (64, 32)
    input_nodes = 32
    num_classes = 10
    batch = 64

    key, k_params, k_x = jax.random.split(key, 3)
    raw_hidden, raw_final = make_raw_params(k_params, fcs, input_nodes, num_classes)
    w_pack, b_pack, _ = fold_params(raw_hidden, raw_final, input_nodes, num_classes)

    x = jax.random.normal(k_x, (batch, input_nodes), jnp.float32)

    # Default tiling: TB=64, grid=(1,) — one step for the whole batch.
    out = network_forward(x, w_pack, b_pack, num_classes)
    out = jax.block_until_ready(out)

    assert out.shape == (batch, num_classes)
    assert bool(jnp.all(jnp.isfinite(out)))
    # Softmax rows must sum to 1.
    assert jnp.allclose(jnp.sum(out, axis=-1), 1.0, atol=1e-5)
    # Match the bf16 folded reference tightly (only matmul accumulation order
    # and the NR-refined reciprocal differ).
    ref_folded = network_reference_folded(x, w_pack, b_pack, num_classes)
    assert jnp.allclose(out, ref_folded, atol=1e-4, rtol=1e-3)
    # Match the original f32 un-folded module within bf16-weight rounding.
    ref_f32 = network_reference_f32(x, raw_hidden, raw_final)
    assert jnp.allclose(out, ref_f32, atol=5e-2)

    # Also exercise the multi-tile (grid > 1) path with batch padding.
    key, k_x2 = jax.random.split(key)
    x2 = jax.random.normal(k_x2, (200, input_nodes), jnp.float32)
    out2 = jax.block_until_ready(
        network_forward(x2, w_pack, b_pack, num_classes, batch_tile=64))
    assert out2.shape == (200, num_classes)
    assert jnp.allclose(jnp.sum(out2, axis=-1), 1.0, atol=1e-5)
    ref2 = network_reference_folded(x2, w_pack, b_pack, num_classes)
    assert jnp.allclose(out2, ref2, atol=1e-4, rtol=1e-3)

    print("KERNEL_OK")
</pallas_src>

<mosaic_0001>
module attributes {stable_mosaic.version = 11 : i64} {
  func.func @_mlp_kernel(%arg0: i32, %arg1: memref<64x128xbf16, #tpu.memory_space<vmem>>, %arg2: memref<3x128x128xbf16, #tpu.memory_space<vmem>>, %arg3: memref<3x128xf32, #tpu.memory_space<vmem>>, %arg4: memref<64x128xf32, #tpu.memory_space<vmem>>) attributes {dimension_semantics = [#tpu.dimension_semantics<parallel>], iteration_bounds = array<i64: 1>, scalar_prefetch = 0 : i64, scratch_operands = 0 : i64, tpu.core_type = #tpu.core_type<tc>, window_params = [{transform_indices = @transform_0, window_bounds = array<i64: 64, 128>}, {pipeline_mode = #tpu.pipeline_mode<synchronous>, transform_indices = @transform_1, window_bounds = array<i64: 3, 128, 128>}, {pipeline_mode = #tpu.pipeline_mode<synchronous>, transform_indices = @transform_2, window_bounds = array<i64: 3, 128>}, {transform_indices = @transform_3, window_bounds = array<i64: 64, 128>}]} {
    %c0 = arith.constant 0 : index
    %c0_0 = arith.constant 0 : index
    %0 = vector.load %arg1[%c0, %c0_0] : memref<64x128xbf16, #tpu.memory_space<vmem>>, vector<64x128xbf16>
    %c0_1 = arith.constant 0 : index
    %c0_2 = arith.constant 0 : index
    %c0_3 = arith.constant 0 : index
    %1 = vector.load %arg2[%c0_1, %c0_2, %c0_3] : memref<3x128x128xbf16, #tpu.memory_space<vmem>>, vector<1x128x128xbf16>
    %2 = vector.shape_cast %1 : vector<1x128x128xbf16> to vector<128x128xbf16>
    %cst = arith.constant dense<0.000000e+00> : vector<64x128xf32>
    %3 = tpu.matmul %0, %2, %cst {dimension_numbers = #tpu.dot_dimension_numbers<[1], [0], [0], [1], [0, 0, 1, 1], [], []>} : vector<64x128xbf16>, vector<128x128xbf16>, vector<64x128xf32> -> vector<64x128xf32>
    %c0_4 = arith.constant 0 : index
    %c0_5 = arith.constant 0 : index
    %4 = vector.load %arg3[%c0_4, %c0_5] : memref<3x128xf32, #tpu.memory_space<vmem>>, vector<1x128xf32>
    %5 = vector.broadcast %4 : vector<1x128xf32> to vector<64x128xf32>
    %6 = arith.addf %3, %5 : vector<64x128xf32>
    %cst_6 = arith.constant 0.000000e+00 : f32
    %7 = vector.broadcast %cst_6 : f32 to vector<64x128xf32>
    %8 = arith.maximumf %6, %7 : vector<64x128xf32>
    %9 = arith.truncf %8 : vector<64x128xf32> to vector<64x128xbf16>
    %c1 = arith.constant 1 : index
    %c0_7 = arith.constant 0 : index
    %c0_8 = arith.constant 0 : index
    %10 = vector.load %arg2[%c1, %c0_7, %c0_8] : memref<3x128x128xbf16, #tpu.memory_space<vmem>>, vector<1x128x128xbf16>
    %11 = vector.shape_cast %10 : vector<1x128x128xbf16> to vector<128x128xbf16>
    %cst_9 = arith.constant dense<0.000000e+00> : vector<64x128xf32>
    %12 = tpu.matmul %9, %11, %cst_9 {dimension_numbers = #tpu.dot_dimension_numbers<[1], [0], [0], [1], [0, 0, 1, 1], [], []>} : vector<64x128xbf16>, vector<128x128xbf16>, vector<64x128xf32> -> vector<64x128xf32>
    %c1_10 = arith.constant 1 : index
    %c0_11 = arith.constant 0 : index
    %13 = vector.load %arg3[%c1_10, %c0_11] : memref<3x128xf32, #tpu.memory_space<vmem>>, vector<1x128xf32>
    %14 = vector.broadcast %13 : vector<1x128xf32> to vector<64x128xf32>
    %15 = arith.addf %12, %14 : vector<64x128xf32>
    %cst_12 = arith.constant 0.000000e+00 : f32
    %16 = vector.broadcast %cst_12 : f32 to vector<64x128xf32>
    %17 = arith.maximumf %15, %16 : vector<64x128xf32>
    %18 = arith.truncf %17 : vector<64x128xf32> to vector<64x128xbf16>
    %c2 = arith.constant 2 : index
    %c0_13 = arith.constant 0 : index
    %c0_14 = arith.constant 0 : index
    %19 = vector.load %arg2[%c2, %c0_13, %c0_14] : memref<3x128x128xbf16, #tpu.memory_space<vmem>>, vector<1x128x128xbf16>
    %20 = vector.shape_cast %19 : vector<1x128x128xbf16> to vector<128x128xbf16>
    %cst_15 = arith.constant dense<0.000000e+00> : vector<64x128xf32>
    %21 = tpu.matmul %18, %20, %cst_15 {dimension_numbers = #tpu.dot_dimension_numbers<[1], [0], [0], [1], [0, 0, 1, 1], [], []>} : vector<64x128xbf16>, vector<128x128xbf16>, vector<64x128xf32> -> vector<64x128xf32>
    %c2_16 = arith.constant 2 : index
    %c0_17 = arith.constant 0 : index
    %22 = vector.load %arg3[%c2_16, %c0_17] : memref<3x128xf32, #tpu.memory_space<vmem>>, vector<1x128xf32>
    %23 = vector.broadcast %22 : vector<1x128xf32> to vector<64x128xf32>
    %24 = arith.addf %21, %23 : vector<64x128xf32>
    %cst_18 = arith.constant dense<0xFF800000> : vector<64xf32>
    %25 = vector.multi_reduction <maximumf>, %24, %cst_18 [1] : vector<64x128xf32> to vector<64xf32>
    %26 = vector.shape_cast %25 : vector<64xf32> to vector<64x1xf32>
    %27 = vector.broadcast %26 : vector<64x1xf32> to vector<64x128xf32>
    %28 = arith.subf %24, %27 : vector<64x128xf32>
    %29 = math.exp %28 : vector<64x128xf32>
    %cst_19 = arith.constant dense<0.000000e+00> : vector<64xf32>
    %30 = vector.multi_reduction <add>, %29, %cst_19 [1] : vector<64x128xf32> to vector<64xf32>
    %31 = vector.shape_cast %30 : vector<64xf32> to vector<64x1xf32>
    %32 = tpu.reciprocal %31 {approx = true} : vector<64x1xf32> -> vector<64x1xf32>
    %33 = arith.mulf %31, %32 : vector<64x1xf32>
    %cst_20 = arith.constant 2.000000e+00 : f32
    %34 = vector.broadcast %cst_20 : f32 to vector<64x1xf32>
    %35 = arith.subf %34, %33 : vector<64x1xf32>
    %36 = arith.mulf %32, %35 : vector<64x1xf32>
    %37 = vector.broadcast %36 : vector<64x1xf32> to vector<64x128xf32>
    %38 = arith.mulf %29, %37 : vector<64x128xf32>
    %c0_21 = arith.constant 0 : index
    %c0_22 = arith.constant 0 : index
    %39 = vector.load %arg4[%c0_21, %c0_22] : memref<64x128xf32, #tpu.memory_space<vmem>>, vector<64x128xf32>
    tpu.vector_store %arg4[%c0_21, %c0_22], %38 {strides = array<i32>} : memref<64x128xf32, #tpu.memory_space<vmem>>, vector<64x128xf32>,
    return
  }
  func.func @transform_0(%arg0: i32) -> (i32, i32) {
    %c0_i32 = arith.constant 0 : i32
    %c0_i32_0 = arith.constant 0 : i32
    return %arg0, %c0_i32 : i32, i32
  }
  func.func @transform_1(%arg0: i32) -> (i32, i32, i32) {
    %c0_i32 = arith.constant 0 : i32
    %c0_i32_0 = arith.constant 0 : i32
    %c0_i32_1 = arith.constant 0 : i32
    %c0_i32_2 = arith.constant 0 : i32
    return %c0_i32, %c0_i32_0, %c0_i32_1 : i32, i32, i32
  }
  func.func @transform_2(%arg0: i32) -> (i32, i32) {
    %c0_i32 = arith.constant 0 : i32
    %c0_i32_0 = arith.constant 0 : i32
    %c0_i32_1 = arith.constant 0 : i32
    return %c0_i32, %c0_i32_0 : i32, i32
  }
  func.func @transform_3(%arg0: i32) -> (i32, i32) {
    %c0_i32 = arith.constant 0 : i32
    %c0_i32_0 = arith.constant 0 : i32
    return %arg0, %c0_i32 : i32, i32
  }
}

</mosaic_0001>

<bundles_post_ra>
// kernel: tpu_custom_call.1
= control target key start
LH: loop header
LB: loop body
LE: loop exit
PB: predicated region body
PF: predicated region fallthrough
CT: control target
= control target key end

     0   :  { %8 = vsyncpa [#allocation3], 0  ;;  %s994_s0 = inlined_call_operand.hbm [shape: bf16[64,128], index: 0, kind: input, shape index: {}]   ;;  %s995_s1 = inlined_call_operand.hbm [shape: bf16[3,128,128], index: 1, kind: input, shape index: {}]   ;;  %s996_s2 = inlined_call_operand.hbm [shape: f32[3,128], index: 2, kind: input, shape index: {}]   ;;  %s997_s3 = inlined_call_operand.hbm [shape: f32[64,128], index: 3, kind: output, shape index: {}]  }
   0x1   :  { %9 = vsyncpa [#allocation6], 0 }
   0x2   :  { %10 = vsyncpa [#allocation4], 0  ;;  %s946_s12 = smov [#allocation5]   ;;  %s947_s14 = smov [#allocation2]  }
   0x3   :  { %s28_s13 = sshll.u32 %s946_s12, 4  ;;  %s16_s15 = sshll.u32 %s947_s14, 4  ;;  %s29_s13 = int_to_ptr.vmem [resolvable:$true] %s28_s13  ;;  %s17_s15 = int_to_ptr.vmem [resolvable:$true] %s16_s15 }
   0x4   :  { %s868_s16 = scalar_lea.vmem %s29_s13, 3072  ;;  %p873_p1 = scmp.lt.s32.totalorder %s29_s13, %s29_s13 }
   0x5   :  { %p869_p0 = scmp.ne.s32.totalorder %s29_s13, %s868_s16  ;;  %p874_p2 = scmp.lt.s32.totalorder %s868_s16, %s868_s16 }
   0x7   :  { %p875_p3 = por %p874_p2, %p873_p1 }
   0x9   :  { %p876_p4 = pnand %p875_p3, %p869_p0 }
   0xb   :  { %879 = shalt.err (!%p876_p4)
}
   0xc   :  { %s948_s17 = smov 64   ;;  %s949_s18 = smov 4  }
   0xd   :  { %34 = dma.hbm_to_vmem [thread:$0]  %s995_s1, 3072, %s29_s13, [#allocation6], %s948_s17, %s948_s17, %s949_s18  }
   0xe   :  { %s888_s21 = scalar_lea.vmem %s17_s15, 512  ;;  %p893_p6 = scmp.lt.s32.totalorder %s17_s15, %s17_s15 }
   0xf   :  { %p889_p5 = scmp.ne.s32.totalorder %s17_s15, %s888_s21  ;;  %p894_p7 = scmp.lt.s32.totalorder %s888_s21, %s888_s21 }
  0x11   :  { %p895_p8 = por %p894_p7, %p893_p6 }
  0x13   :  { %p896_p9 = pnand %p895_p8, %p889_p5 }
  0x15   :  { %899 = shalt.err (!%p896_p9)
}
  0x16   :  { %22 = dma.hbm_to_vmem [thread:$0]  %s994_s0, 512, %s17_s15, [#allocation3], %s948_s17, %s948_s17, %s949_s18  }
  0x17   :  { %s950_s24 = smov [#allocation7]  }
  0x18   :  { %s41_s25 = sshll.u32 %s950_s24, 4  ;;  %s42_s25 = int_to_ptr.vmem [resolvable:$true] %s41_s25 }
  0x19   :  { %s908_s26 = scalar_lea.vmem %s42_s25, 64  ;;  %p913_p11 = scmp.lt.s32.totalorder %s42_s25, %s42_s25 }
  0x1a   :  { %p909_p10 = scmp.ne.s32.totalorder %s42_s25, %s908_s26  ;;  %p914_p12 = scmp.lt.s32.totalorder %s908_s26, %s908_s26 }
  0x1c   :  { %p915_p13 = por %p914_p12, %p913_p11 }
  0x1e   :  { %p916_p0 = pnand %p915_p13, %p909_p10 }
  0x20   :  { %919 = shalt.err (!%p916_p0)
}
  0x21   :  { %44 = dma.hbm_to_vmem [thread:$0]  %s996_s2, 64, %s42_s25, [#allocation6]  }
  0x22   :  { %940 = dma.done.wait [#allocation3], 512  }
  0x23   :  { %941 = vsyncadd [#allocation3], 4294966784 }
  0x24   :  { %942 = dma.done.wait [#allocation6], 3136  }
  0x25   :  { %943 = vsyncadd [#allocation6], 4294964160  ;;  %v800_v0 = vld [vmem:[#allocation5 + $0x38] sm:$0xff]   ;;  %v801_v1 = vld [vmem:[#allocation5 + $0x30] sm:$0xff]   ;;  %s951_s0 = smov [#allocation8]  }
  0x26   :  { %704 = vmatprep.subr.bf16.mxu0 %v800_v0  ;;  %v802_v2 = vld [vmem:[#allocation5 + $0x28] sm:$0xff]   ;;  %v803_v3 = vld [vmem:[#allocation5 + $0x20] sm:$0xff]   ;;  %v804_v5 = vld [vmem:[#allocation5 + $0x18] sm:$0xff]   ;;  %s624_s2 = sshll.u32 %s951_s0, 4  ;;  %s625_s2 = int_to_ptr.vmem [resolvable:$true] %s624_s2 }
  0x27   :  { %705 = vmatpush3.bf16.msra.mxu0 %v800_v0  ;;  %v808_v4 = vld [vmem:[#allocation2] sm:$0xff]   ;;  %v812_v6 = vld [vmem:[#allocation5 + $0x78] sm:$0xff]   ;;  %v813_v7 = vld [vmem:[#allocation5 + $0x70] sm:$0xff]   ;;  %s920_s28 = scalar_lea.vmem %s625_s2, 1024  ;;  %p925_p2 = scmp.lt.s32.totalorder %s625_s2, %s625_s2 }
  0x28   :  { %706 = vmatprep.subr.bf16.mxu0 %v801_v1  ;;  %720 = vmatprep.mubr.bf16.mxu0 %v808_v4  ;;  %v805_v8 = vld [vmem:[#allocation5 + $0x10] sm:$0xff]   ;;  %v814_v9 = vld [vmem:[#allocation5 + $0x68] sm:$0xff]   ;;  %v815_v11 = vld [vmem:[#allocation5 + $0x60] sm:$0xff]   ;;  %p921_p1 = scmp.ne.s32.totalorder %s625_s2, %s920_s28  ;;  %p926_p3 = scmp.lt.s32.totalorder %s920_s28, %s920_s28 }
  0x29   :  { %728 = vmatprep.subr.bf16.mxu1 %v812_v6  ;;  %v806_v10 = vld [vmem:[#allocation5 + $0x8] sm:$0xff]   ;;  %v807_v12 = vld [vmem:[#allocation5] sm:$0xff]   ;;  %v816_v13 = vld [vmem:[#allocation5 + $0x58] sm:$0xff]  }
  0x2a   :  { %729 = vmatpush3.bf16.msra.mxu1 %v812_v6  ;;  %v809_v14 = vld [vmem:[#allocation2 + $0x8] sm:$0xff]   ;;  %v810_v15 = vld [vmem:[#allocation2 + $0x10] sm:$0xff]   ;;  %v811_v16 = vld [vmem:[#allocation2 + $0x18] sm:$0xff]   ;;  %p927_p4 = por %p926_p3, %p925_p2 }
  0x2b   :  { %707 = vmatpush3.bf16.msra.mxu0 %v801_v1  ;;  %730 = vmatprep.subr.bf16.mxu1 %v813_v7  ;;  %v817_v17 = vld [vmem:[#allocation5 + $0x50] sm:$0xff]   ;;  %v818_v18 = vld [vmem:[#allocation5 + $0x48] sm:$0xff]   ;;  %v819_v19 = vld [vmem:[#allocation5 + $0x40] sm:$0xff]  }
  0x2c   :  { %708 = vmatprep.subr.bf16.mxu0 %v802_v2  ;;  %v820_v20 = vld [vmem:[#allocation5 + $0xb8] sm:$0xff]   ;;  %v821_v21 = vld [vmem:[#allocation5 + $0xb0] sm:$0xff]   ;;  %v822_v22 = vld [vmem:[#allocation5 + $0xa8] sm:$0xff]   ;;  %p928_p5 = pnand %p927_p4, %p921_p1 }
  0x2d   :  { %v823_v23 = vld [vmem:[#allocation5 + $0xa0] sm:$0xff]   ;;  %v824_v24 = vld [vmem:[#allocation5 + $0x98] sm:$0xff]   ;;  %v825_v54 = vld [vmem:[#allocation5 + $0x90] sm:$0xff]  }
  0x2e   :  { %731 = vmatpush3.bf16.msra.mxu1 %v813_v7  ;;  %v637_v27 = vld [vmem:[#allocation7] ss:$0 sm:$0xff]  ;;  %v826_v55 = vld [vmem:[#allocation5 + $0x88] sm:$0xff]   ;;  %v650_v59 = vld [vmem:[#allocation7 + $0x1] ss:$0 sm:$0xff] }
  0x2f   :  { %709 = vmatpush3.bf16.msra.mxu0 %v802_v2  ;;  %732 = vmatprep.subr.bf16.mxu1 %v814_v9  ;;  %v827_v56 = vld [vmem:[#allocation5 + $0x80] sm:$0xff]  }
  0x30   :  { %710 = vmatprep.subr.bf16.mxu0 %v803_v3 }
  0x32   :  { %733 = vmatpush3.bf16.msra.mxu1 %v814_v9 }
  0x33   :  { %711 = vmatpush3.bf16.msra.mxu0 %v803_v3  ;;  %734 = vmatprep.subr.bf16.mxu1 %v815_v11 }
  0x34   :  { %712 = vmatprep.subr.bf16.mxu0 %v804_v5 }
  0x36   :  { %735 = vmatpush3.bf16.msra.mxu1 %v815_v11 }
  0x37   :  { %713 = vmatpush3.bf16.msra.mxu0 %v804_v5  ;;  %736 = vmatprep.subr.bf16.mxu1 %v816_v13 }
  0x38   :  { %714 = vmatprep.subr.bf16.mxu0 %v805_v8 }
  0x3a   :  { %737 = vmatpush3.bf16.msra.mxu1 %v816_v13 }
  0x3b   :  { %715 = vmatpush3.bf16.msra.mxu0 %v805_v8  ;;  %738 = vmatprep.subr.bf16.mxu1 %v817_v17 }
  0x3c   :  { %716 = vmatprep.subr.bf16.mxu0 %v806_v10 }
  0x3e   :  { %739 = vmatpush3.bf16.msra.mxu1 %v817_v17 }
  0x3f   :  { %717 = vmatpush3.bf16.msra.mxu0 %v806_v10  ;;  %740 = vmatprep.subr.bf16.mxu1 %v818_v18 }
  0x40   :  { %718 = vmatprep.subr.bf16.mxu0 %v807_v12 }
  0x42   :  { %741 = vmatpush3.bf16.msra.mxu1 %v818_v18 }
  0x43   :  { %719 = vmatpush3.bf16.msra.mxu0 %v807_v12  ;;  %742 = vmatprep.subr.bf16.mxu1 %v819_v19 }
  0x44   :  { %752 = vmatprep.subr.bf16.mxu0 %v820_v20 }
  0x46   :  { %721 = vmatmul.mubr.bf16.vlgmr.msra.gmra.mxu0 %v809_v14  ;;  %743 = vmatpush3.bf16.msra.mxu1 %v819_v19 }
  0x47   :  { %724 = vmatprep.mubr.bf16.mxu0 %v810_v15  ;;  %776 = vmatprep.subr.bf16.mxu1 %v820_v20 }
  0x48   :  { %753 = vmatpush3.bf16.msra.mxu0 %v820_v20 }
  0x49   :  { %754 = vmatprep.subr.bf16.mxu0 %v821_v21 }
  0x4c   :  { %755 = vmatpush3.bf16.msra.mxu0 %v821_v21 }
  0x4d   :  { %756 = vmatprep.subr.bf16.mxu0 %v822_v22 }
  0x4e   :  { %725 = vmatmul.mubr.bf16.gmra.mxu0 %v811_v16 }
  0x50   :  { %757 = vmatpush3.bf16.msra.mxu0 %v822_v22 }
  0x51   :  { %758 = vmatprep.subr.bf16.mxu0 %v823_v23 }
  0x54   :  { %759 = vmatpush3.bf16.msra.mxu0 %v823_v23 }
  0x55   :  { %760 = vmatprep.subr.bf16.mxu0 %v824_v24 }
  0x58   :  { %761 = vmatpush3.bf16.msra.mxu0 %v824_v24 }
  0x59   :  { %762 = vmatprep.subr.bf16.mxu0 %v825_v54 }
  0x5c   :  { %763 = vmatpush3.bf16.msra.mxu0 %v825_v54 }
  0x5d   :  { %764 = vmatprep.subr.bf16.mxu0 %v826_v55 }
  0x60   :  { %765 = vmatpush3.bf16.msra.mxu0 %v826_v55 }
  0x61   :  { %766 = vmatprep.subr.bf16.mxu0 %v827_v56 }
  0x64   :  { %767 = vmatpush3.bf16.msra.mxu0 %v827_v56 }
 0x106   :  { %v722_v25 = vpop.f32.mrf.mxu0 }
 0x107   :  { %v199_v31 = vadd.f32 %v722_v25, %v637_v27 }
 0x108   :  { %v190_v26 = vpop.f32.mrf.mxu0 }
 0x109   :  { %v191_v29 = vadd.f32 %v637_v27, %v190_v26  ;;  %v223_v38 = vmax.f32 %v199_v31, 0.0 }
 0x10a   :  { %v723_v28 = vpop.f32.mrf.mxu0 }
 0x10b   :  { %v202_v30 = vadd.f32 %v723_v28, %v637_v27  ;;  %v221_v36 = vmax.f32 %v191_v29, 0.0 }
 0x10c   :  { %v193_v32 = vpop.f32.mrf.mxu0 }
 0x10d   :  { %v194_v33 = vadd.f32 %v637_v27, %v193_v32  ;;  %v224_v34 = vmax.f32 %v202_v30, 0.0 }
 0x10e   :  { %v726_v35 = vpop.f32.mrf.mxu0 }
 0x10f   :  { %v222_v37 = vmax.f32 %v194_v33, 0.0  ;;  %v230_v41 = vpack.c.bf16 %v224_v34, %v223_v38  ;;  %v215_v45 = vadd.f32 %v726_v35, %v637_v27 }
 0x110   :  { %v206_v39 = vpop.f32.mrf.mxu0 }
 0x111   :  { %v229_v40 = vpack.c.bf16 %v222_v37, %v221_v36  ;;  %v207_v43 = vadd.f32 %v637_v27, %v206_v39  ;;  %v227_v51 = vmax.f32 %v215_v45, 0.0 }
 0x112   :  { %v727_v42 = vpop.f32.mrf.mxu0 }
 0x113   :  { %v218_v44 = vadd.f32 %v727_v42, %v637_v27  ;;  %744 = vmatprep.mubr.bf16.mxu1 %v229_v40  ;;  %v225_v49 = vmax.f32 %v207_v43, 0.0 }
 0x114   :  { %v209_v46 = vpop.f32.mrf.mxu0  ;;  %745 = vmatmul.mubr.bf16.vlgmr.msra.gmra.mxu1 %v230_v41 }
 0x115   :  { %v210_v47 = vadd.f32 %v637_v27, %v209_v46  ;;  %784 = vmatpush3.bf16.msra.mxu1 %v820_v20  ;;  %v228_v48 = vmax.f32 %v218_v44, 0.0 }
 0x116   :  { %777 = vmatprep.subr.bf16.mxu1 %v821_v21 }
 0x117   :  { %v226_v50 = vmax.f32 %v210_v47, 0.0  ;;  %v232_v53 = vpack.c.bf16 %v228_v48, %v227_v51 }
 0x119   :  { %v231_v52 = vpack.c.bf16 %v226_v50, %v225_v49  ;;  %785 = vmatpush3.bf16.msra.mxu1 %v821_v21 }
 0x11a   :  { %778 = vmatprep.subr.bf16.mxu1 %v822_v22 }
 0x11b   :  { %748 = vmatprep.mubr.bf16.mxu1 %v231_v52 }
 0x11c   :  { %749 = vmatmul.mubr.bf16.gmra.mxu1 %v232_v53 }
 0x11d   :  { %786 = vmatpush3.bf16.msra.mxu1 %v822_v22  ;;  %v659_v22 = vld [vmem:[#allocation7 + $0x2] ss:$0 sm:$0xff] }
 0x11e   :  { %779 = vmatprep.subr.bf16.mxu1 %v823_v23 }
 0x121   :  { %787 = vmatpush3.bf16.msra.mxu1 %v823_v23 }
 0x122   :  { %780 = vmatprep.subr.bf16.mxu1 %v824_v24 }
 0x125   :  { %788 = vmatpush3.bf16.msra.mxu1 %v824_v24 }
 0x126   :  { %781 = vmatprep.subr.bf16.mxu1 %v825_v54 }
 0x129   :  { %789 = vmatpush3.bf16.msra.mxu1 %v825_v54 }
 0x12a   :  { %782 = vmatprep.subr.bf16.mxu1 %v826_v55 }
 0x12d   :  { %790 = vmatpush3.bf16.msra.mxu1 %v826_v55 }
 0x12e   :  { %783 = vmatprep.subr.bf16.mxu1 %v827_v56 }
 0x131   :  { %791 = vmatpush3.bf16.msra.mxu1 %v827_v56 }
 0x1d4   :  { %v746_v57 = vpop.f32.mrf.mxu1 }
 0x1d5   :  { %v346_v63 = vadd.f32 %v746_v57, %v650_v59 }
 0x1d6   :  { %v337_v58 = vpop.f32.mrf.mxu1 }
 0x1d7   :  { %v338_v61 = vadd.f32 %v650_v59, %v337_v58  ;;  %v370_v6 = vmax.f32 %v346_v63, 0.0 }
 0x1d8   :  { %v747_v60 = vpop.f32.mrf.mxu1 }
 0x1d9   :  { %v349_v62 = vadd.f32 %v747_v60, %v650_v59  ;;  %v368_v4 = vmax.f32 %v338_v61, 0.0 }
 0x1da   :  { %v340_v0 = vpop.f32.mrf.mxu1 }
 0x1db   :  { %v341_v1 = vadd.f32 %v650_v59, %v340_v0  ;;  %v371_v2 = vmax.f32 %v349_v62, 0.0 }
 0x1dc   :  { %v750_v3 = vpop.f32.mrf.mxu1 }
 0x1dd   :  { %v369_v5 = vmax.f32 %v341_v1, 0.0  ;;  %v377_v9 = vpack.c.bf16 %v371_v2, %v370_v6  ;;  %v362_v13 = vadd.f32 %v750_v3, %v650_v59 }
 0x1de   :  { %v353_v7 = vpop.f32.mrf.mxu1 }
 0x1df   :  { %v376_v8 = vpack.c.bf16 %v369_v5, %v368_v4  ;;  %v354_v11 = vadd.f32 %v650_v59, %v353_v7  ;;  %v374_v19 = vmax.f32 %v362_v13, 0.0 }
 0x1e0   :  { %v751_v10 = vpop.f32.mrf.mxu1 }
 0x1e1   :  { %v365_v12 = vadd.f32 %v751_v10, %v650_v59  ;;  %768 = vmatprep.mubr.bf16.mxu0 %v376_v8  ;;  %v372_v17 = vmax.f32 %v354_v11, 0.0 }
 0x1e2   :  { %v356_v14 = vpop.f32.mrf.mxu1  ;;  %769 = vmatmul.mubr.bf16.vlgmr.msra.gmra.mxu0 %v377_v9 }
 0x1e3   :  { %v357_v15 = vadd.f32 %v650_v59, %v356_v14  ;;  %v375_v16 = vmax.f32 %v365_v12, 0.0 }
 0x1e5   :  { %v373_v18 = vmax.f32 %v357_v15, 0.0  ;;  %v379_v21 = vpack.c.bf16 %v375_v16, %v374_v19 }
 0x1e7   :  { %v378_v20 = vpack.c.bf16 %v373_v18, %v372_v17 }
 0x1e9   :  { %772 = vmatprep.mubr.bf16.mxu1 %v378_v20 }
 0x1ea   :  { %773 = vmatmul.mubr.bf16.vlgmr.msra.gmra.mxu1 %v379_v21 }
 0x2a2   :  { %v770_v23 = vpop.f32.mrf.mxu0 }
 0x2a3   :  { %v493_v24 = vadd.f32 %v770_v23, %v659_v22 }
 0x2a4   :  { %v484_v25 = vpop.f32.mrf.mxu0 }
 0x2a5   :  { %v485_v26 = vadd.f32 %v659_v22, %v484_v25  ;;  %519 = vmax.xlane.f32.xlu1 %v493_v24 }
 0x2a6   :  { %v771_v27 = vpop.f32.mrf.mxu0 }
 0x2a7   :  { %v496_v28 = vadd.f32 %v771_v27, %v659_v22  ;;  %515 = vmax.xlane.f32.xlu0 %v485_v26 }
 0x2a8   :  { %v487_v29 = vpop.f32.mrf.mxu0 }
 0x2a9   :  { %v488_v30 = vadd.f32 %v659_v22, %v487_v29  ;;  %521 = vmax.xlane.f32.xlu1 %v496_v28 }
 0x2aa   :  { %v774_v31 = vpop.f32.mrf.mxu1 }
 0x2ab   :  { %517 = vmax.xlane.f32.xlu0 %v488_v30  ;;  %v509_v36 = vadd.f32 %v774_v31, %v659_v22 }
 0x2ac   :  { %v500_v32 = vpop.f32.mrf.mxu1 }
 0x2ad   :  { %v501_v33 = vadd.f32 %v659_v22, %v500_v32 }
 0x2ae   :  { %v775_v34 = vpop.f32.mrf.mxu1 }
 0x2af   :  { %523 = vmax.xlane.f32.xlu0 %v501_v33  ;;  %v512_v38 = vadd.f32 %v775_v34, %v659_v22 }
 0x2b0   :  { %v503_v35 = vpop.f32.mrf.mxu1 }
 0x2b1   :  { %v504_v37 = vadd.f32 %v659_v22, %v503_v35 }
 0x2b3   :  { %525 = vmax.xlane.f32.xlu1 %v504_v37  ;;  %527 = vmax.xlane.f32.xlu0 %v509_v36 }
 0x2b7   :  { %529 = vmax.xlane.f32.xlu1 %v512_v38 }
 0x32e   :  { %v520_v39 = vpop.xlane.xlu1 %519 }
 0x32f   :  { %v533_v40 = vsub.f32 %v493_v24, %v520_v39 }
 0x330   :  { %v516_v41 = vpop.xlane.xlu0 %515 }
 0x331   :  { %v543_v42 = vmul.f32 1.442695, %v533_v40  ;;  %v531_v43 = vsub.f32 %v485_v26, %v516_v41 }
 0x332   :  { %v522_v44 = vpop.xlane.xlu1 %521 }
 0x333   :  { %828 = vpow2.f32 %v543_v42  ;;  %v539_v45 = vmul.f32 1.442695, %v531_v43  ;;  %v534_v46 = vsub.f32 %v496_v28, %v522_v44 }
 0x334   :  { %v518_v47 = vpop.xlane.xlu0 %517 }
 0x335   :  { %v545_v48 = vmul.f32 1.442695, %v534_v46  ;;  %v532_v49 = vsub.f32 %v488_v30, %v518_v47  ;;  %830 = vpow2.f32 %v539_v45 }
 0x337   :  { %832 = vpow2.f32 %v545_v48  ;;  %v541_v50 = vmul.f32 1.442695, %v532_v49 }
 0x338   :  { %v524_v51 = vpop.xlane.xlu0 %523 }
 0x339   :  { %v535_v52 = vsub.f32 %v501_v33, %v524_v51  ;;  %834 = vpow2.f32 %v541_v50 }
 0x33b   :  { %v547_v53 = vmul.f32 1.442695, %v535_v52 }
 0x33c   :  { %v526_v54 = vpop.xlane.xlu1 %525  ;;  %v528_v55 = vpop.xlane.xlu0 %527 }
 0x33d   :  { %836 = vpow2.f32 %v547_v53  ;;  %v536_v56 = vsub.f32 %v504_v37, %v526_v54  ;;  %v537_v57 = vsub.f32 %v509_v36, %v528_v55 }
 0x33f   :  { %v549_v58 = vmul.f32 1.442695, %v536_v56  ;;  %v551_v59 = vmul.f32 1.442695, %v537_v57 }
 0x340   :  { %v829_v60 = vpop.eup %828  ;;  %v530_v61 = vpop.xlane.xlu1 %529 }
 0x341   :  { %838 = vpow2.f32 %v549_v58  ;;  %v538_v62 = vsub.f32 %v512_v38, %v530_v61  ;;  %559 = vadd.xlane.f32.xlu0 %v829_v60 }
 0x342   :  { %840 = vpow2.f32 %v551_v59  ;;  %v831_v63 = vpop.eup %830 }
 0x343   :  { %v553_v0 = vmul.f32 1.442695, %v538_v62 }
 0x344   :  { %v833_v1 = vpop.eup %832 }
 0x345   :  { %842 = vpow2.f32 %v553_v0  ;;  %561 = vadd.xlane.f32.xlu1 %v833_v1  ;;  %555 = vadd.xlane.f32.xlu0 %v831_v63 }
 0x346   :  { %v835_v2 = vpop.eup %834 }
 0x349   :  { %557 = vadd.xlane.f32.xlu1 %v835_v2 }
 0x34a   :  { %v837_v3 = vpop.eup %836 }
 0x34b   :  { %563 = vadd.xlane.f32.xlu0 %v837_v3 }
 0x34e   :  { %v839_v4 = vpop.eup %838 }
 0x34f   :  { %v983_v5 = vpop.eup %840  ;;  %565 = vadd.xlane.f32.xlu1 %v839_v4 }
 0x350   :  { %567 = vadd.xlane.f32.xlu0 %v983_v5 }
 0x352   :  { %v986_v6 = vpop.eup %842 }
 0x353   :  { %569 = vadd.xlane.f32.xlu1 %v986_v6 }
 0x3ca   :  { %v560_v7 = vpop.xlane.xlu0 %559 }
 0x3cb   :  { %844 = vrcp.f32 %v560_v7 }
 0x3ce   :  { %v562_v8 = vpop.xlane.xlu1 %561  ;;  %v556_v9 = vpop.xlane.xlu0 %555 }
 0x3cf   :  { %846 = vrcp.f32 %v562_v8 }
 0x3d0   :  { %848 = vrcp.f32 %v556_v9 }
 0x3d2   :  { %v558_v10 = vpop.xlane.xlu1 %557 }
 0x3d3   :  { %850 = vrcp.f32 %v558_v10 }
 0x3d4   :  { %v564_v11 = vpop.xlane.xlu0 %563 }
 0x3d5   :  { %852 = vrcp.f32 %v564_v11 }
 0x3d8   :  { %v845_v12 = vpop.eup %844  ;;  %v566_v13 = vpop.xlane.xlu1 %565 }
 0x3d9   :  { %v581_v14 = vmul.f32 %v845_v12, %v560_v7  ;;  %854 = vrcp.f32 %v566_v13  ;;  %v568_v15 = vpop.xlane.xlu0 %567 }
 0x3da   :  { %856 = vrcp.f32 %v568_v15 }
 0x3db   :  { %v589_v16 = vsub.f32 2.0, %v581_v14 }
 0x3dc   :  { %v847_v17 = vpop.eup %846  ;;  %v570_v18 = vpop.xlane.xlu1 %569 }
 0x3dd   :  { %v849_v19 = vpop.eup %848  ;;  %v597_v20 = vmul.f32 %v845_v12, %v589_v16  ;;  %v582_v21 = vmul.f32 %v847_v17, %v562_v8  ;;  %858 = vrcp.f32 %v570_v18 }
 0x3de   :  { %v579_v22 = vmul.f32 %v849_v19, %v556_v9 }
 0x3df   :  { %v605_v23 = vmul.f32 %v829_v60, %v597_v20  ;;  %v590_v24 = vsub.f32 2.0, %v582_v21 }
 0x3e0   :  { %v851_v25 = vpop.eup %850  ;;  %v587_v26 = vsub.f32 2.0, %v579_v22 }
 0x3e1   :  { %613 = vst [vmem:[#allocation8 + $0x10] sm:$0xff] %v605_v23  ;;  %v598_v27 = vmul.f32 %v847_v17, %v590_v24  ;;  %v580_v28 = vmul.f32 %v851_v25, %v558_v10 }
 0x3e2   :  { %v853_v29 = vpop.eup %852  ;;  %v595_v30 = vmul.f32 %v849_v19, %v587_v26 }
 0x3e3   :  { %v606_v31 = vmul.f32 %v833_v1, %v598_v27  ;;  %v588_v32 = vsub.f32 2.0, %v580_v28  ;;  %v583_v33 = vmul.f32 %v853_v29, %v564_v11 }
 0x3e4   :  { %v603_v34 = vmul.f32 %v831_v63, %v595_v30 }
 0x3e5   :  { %614 = vst [vmem:[#allocation8 + $0x18] sm:$0xff] %v606_v31  ;;  %v596_v35 = vmul.f32 %v851_v25, %v588_v32  ;;  %v591_v36 = vsub.f32 2.0, %v583_v33 }
 0x3e6   :  { %v855_v37 = vpop.eup %854  ;;  %611 = vst [vmem:[#allocation8] sm:$0xff] %v603_v34 }
 0x3e7   :  { %v857_v38 = vpop.eup %856  ;;  %v604_v39 = vmul.f32 %v835_v2, %v596_v35  ;;  %v599_v40 = vmul.f32 %v853_v29, %v591_v36  ;;  %v584_v41 = vmul.f32 %v855_v37, %v566_v13 }
 0x3e8   :  { %v585_v42 = vmul.f32 %v857_v38, %v568_v15 }
 0x3e9   :  { %612 = vst [vmem:[#allocation8 + $0x8] sm:$0xff] %v604_v39  ;;  %v607_v43 = vmul.f32 %v837_v3, %v599_v40  ;;  %v592_v44 = vsub.f32 2.0, %v584_v41 }
 0x3ea   :  { %v859_v45 = vpop.eup %858  ;;  %v593_v46 = vsub.f32 2.0, %v585_v42 }
 0x3eb   :  { %615 = vst [vmem:[#allocation8 + $0x20] sm:$0xff] %v607_v43  ;;  %v600_v47 = vmul.f32 %v855_v37, %v592_v44  ;;  %v586_v48 = vmul.f32 %v859_v45, %v570_v18 }
 0x3ec   :  { %v601_v49 = vmul.f32 %v857_v38, %v593_v46 }
 0x3ed   :  { %v608_v50 = vmul.f32 %v839_v4, %v600_v47  ;;  %v594_v51 = vsub.f32 2.0, %v586_v48 }
 0x3ee   :  { %v609_v52 = vmul.f32 %v983_v5, %v601_v49 }
 0x3ef   :  { %616 = vst [vmem:[#allocation8 + $0x28] sm:$0xff] %v608_v50  ;;  %v602_v53 = vmul.f32 %v859_v45, %v594_v51 }
 0x3f0   :  { %617 = vst [vmem:[#allocation8 + $0x30] sm:$0xff] %v609_v52 }
 0x3f1   :  { %v610_v54 = vmul.f32 %v986_v6, %v602_v53 }
 0x3f3   :  { %618 = vst [vmem:[#allocation8 + $0x38] sm:$0xff] %v610_v54 }
 0x3f4   :  { %931 = shalt.err (!%p928_p5)
}
 0x3f5   :  { %s952_s29 = smov 128   ;;  %s953_s30 = smov 8  }
 0x3f6   :  { %630 = dma.vmem_to_hbm [thread:$0]  %s625_s2, 1024, %s997_s3, [#allocation4], %s952_s29, %s952_s29, %s953_s30  }
 0x3f7   :  { %944 = dma.done.wait [#allocation4], 1024  }
 0x3f8   :  { %945 = vsyncadd [#allocation4], 4294966272 }
 0x3f9   :  { %634 = vsyncpa [#allocation3], 1 }
 0x3fa   :  { %635 = vsyncpa [#allocation6], 1 }
 0x3fb   :  { %636 = vsyncpa [#allocation4], 1 }

</bundles_post_ra>
